<compile_context>
chip_gen: v6e
topology: v6e:2x2x1
jax: 0.10.0
libtpu: 0.0.40
codegen_flags: <defaults>
</compile_context>

<pallas_src>
import jax
import jax.numpy as jnp
from jax import lax
from jax.experimental import pallas as pl
from jax.experimental.pallas import tpu as pltpu


def _make_nb_kernel(weights, padding):
    """Kernel computing a fixed-window 1-D cross-correlation with zero padding."""
    offsets = tuple(k - padding for k in range(len(weights)))

    def kernel(x_ref, o_ref):
        x = x_ref[...]
        if not jnp.issubdtype(x.dtype, jnp.floating):
            x = x.astype(jnp.float32)
        L = x.shape[-1]
        lane = x.ndim - 1
        # One lane-index iota, hoisted and shared by every tap.
        col = lax.broadcasted_iota(jnp.int32, x.shape, dimension=lane)
        acc = None
        for w, d in zip(weights, offsets):
            if d == 0:
                term = x if w == 1.0 else w * x
            else:
                # shifted[..., i] = x[..., i + d]; the wrapped lanes are zeroed
                # (single compare + select), reproducing conv1d's zero padding.
                shifted = pltpu.roll(x, shift=(-d) % L, axis=lane)
                valid = (col < (L - d)) if d > 0 else (col >= (-d))
                shifted = jnp.where(valid, shifted, jnp.zeros_like(shifted))
                term = shifted if w == 1.0 else w * shifted
            acc = term if acc is None else acc + term
        o_ref[...] = acc.astype(o_ref.dtype)

    return kernel


def _sublane_tile(dtype):
    # Native sublane packing: 8 rows for 4-byte, 16 for 2-byte, 32 for 1-byte.
    itemsize = jnp.dtype(dtype).itemsize
    return max(8, 32 // max(itemsize, 1))


def _choose_row_block(n_rows, row_bytes, sublane):
    # ~2 MiB per block: already at the HBM roofline, and with in+out double
    # buffered plus kernel temporaries this stays far below every chip's VMEM.
    target = 2 * 1024 * 1024
    rows = max(sublane, (target // max(row_bytes, 1)) // sublane * sublane)
    # Prefer >=4 grid steps (pipelining), fall back to >=2 (v7x two-TC sharding),
    # without dropping below one sublane tile of rows per block.
    for steps in (4, 2):
        cap = (n_rows // steps) // sublane * sublane
        if cap >= sublane:
            rows = min(rows, cap)
            break
    if rows >= n_rows:
        rows = n_rows  # single full-extent block (whole batch fits one block)
    return rows


def _vmem_limit_bytes():
    # Generation-aware scoped-VMEM limit: at most half of physical VMEM,
    # capped at 32 MiB (ample for ~2 MiB blocks; safe on v7x's 64 MiB/TC).
    try:
        cap = pltpu.get_tpu_info().vmem_capacity_bytes
    except Exception:
        cap = 128 * 1024 * 1024
    return int(min(32 * 1024 * 1024, cap // 2))


def neighbour_balancing_pallas(x, weights=(0.5, 1.0, 0.5)):
    """x: (B, L) array.  Returns conv1d(x, weights, padding=len(weights)//2)."""
    assert x.ndim == 2, "expected (batch, length) input"
    B, L = x.shape
    weights = tuple(float(w) for w in weights)
    padding = len(weights) // 2

    # Keep the lane axis a multiple of 128 (lane-dense, unmasked stores).
    # Right zero-padding matches conv1d's own virtual zero padding, so the
    # first L output columns are unchanged; slice them back out afterwards.
    Lp = ((L + 127) // 128) * 128
    xp = jnp.pad(x, ((0, 0), (0, Lp - L))) if Lp != L else x

    sublane = _sublane_tile(x.dtype)
    rows = _choose_row_block(B, Lp * x.dtype.itemsize, sublane)
    grid = (pl.cdiv(B, rows),)

    # TODO(synk): add a column-tiled grid axis (with a 1-element halo fix-up)
    # for the batch-tiny / sequence-huge regime, where row blocking alone gives
    # a single grid step and the full row must fit in one VMEM block.

    kernel = _make_nb_kernel(weights, padding)
    out = pl.pallas_call(
        kernel,
        out_shape=jax.ShapeDtypeStruct((B, Lp), x.dtype),
        grid_spec=pltpu.PrefetchScalarGridSpec(
            num_scalar_prefetch=0,
            grid=grid,
            in_specs=[pl.BlockSpec((rows, Lp), lambda i: (i, 0))],
            out_specs=pl.BlockSpec((rows, Lp), lambda i: (i, 0)),
        ),
        compiler_params=pltpu.CompilerParams(
            dimension_semantics=("parallel",),
            vmem_limit_bytes=_vmem_limit_bytes(),
        ),
    )(xp)
    return out[:, :L] if Lp != L else out


def _reference(x, weights=(0.5, 1.0, 0.5)):
    """Pure-JAX reference: the cross-correlation F.conv1d performs."""
    L = x.shape[-1]
    pad = len(weights) // 2
    xpad = jnp.pad(x, ((0, 0), (pad, pad)))
    return sum(w * xpad[:, k:k + L] for k, w in enumerate(weights))


if __name__ == "__main__":
    key = jax.random.PRNGKey(0)
    k1, k2, k3 = jax.random.split(key, 3)

    # 1) Small canonical shape (lane-dense L, single block).
    # 2) Multi-step grid with a partial last row block (B=20, rows=8).
    # 3) Non-128 L (exercises lane padding + slice) and B below the sublane tile.
    cases = [
        jax.random.normal(k1, (4, 128), dtype=jnp.float32),
        jax.random.normal(k2, (20, 256), dtype=jnp.float32),
        jax.random.normal(k3, (3, 100), dtype=jnp.float32),
    ]

    for x in cases:
        out = jax.block_until_ready(neighbour_balancing_pallas(x))
        ref = _reference(x)
        assert out.shape == x.shape and out.dtype == x.dtype
        assert bool(jnp.allclose(out, ref, atol=1e-5, rtol=1e-5)), (
            f"mismatch vs reference for shape {x.shape}")

    print("KERNEL_OK")
</pallas_src>

<mosaic_0001>
module attributes {stable_mosaic.version = 11 : i64} {
  func.func @kernel(%arg0: i32, %arg1: memref<4x128xf32, #tpu.memory_space<vmem>>, %arg2: memref<4x128xf32, #tpu.memory_space<vmem>>) attributes {dimension_semantics = [#tpu.dimension_semantics<parallel>], iteration_bounds = array<i64: 1>, scalar_prefetch = 0 : i64, scratch_operands = 0 : i64, tpu.core_type = #tpu.core_type<tc>, window_params = [{transform_indices = @transform_0, window_bounds = array<i64: 4, 128>}, {transform_indices = @transform_1, window_bounds = array<i64: 4, 128>}]} {
    %c0 = arith.constant 0 : index
    %c0_0 = arith.constant 0 : index
    %0 = vector.load %arg1[%c0, %c0_0] : memref<4x128xf32, #tpu.memory_space<vmem>>, vector<4x128xf32>
    %1 = tpu.iota {dimensions = array<i32: 1>} : vector<4x128xi32>
    %c1_i32 = arith.constant 1 : i32
    %2 = tpu.dynamic_rotate %0 by %c1_i32 dim 1 : vector<4x128xf32>, i32 -> vector<4x128xf32>
    %c1_i32_1 = arith.constant 1 : i32
    %3 = vector.broadcast %c1_i32_1 : i32 to vector<4x128xi32>
    %4 = arith.cmpi sge, %1, %3 : vector<4x128xi32>
    %cst = arith.constant 0.000000e+00 : f32
    %5 = vector.broadcast %cst : f32 to vector<4x128xf32>
    %6 = arith.select %4, %2, %5 : vector<4x128xi1>, vector<4x128xf32>
    %cst_2 = arith.constant 5.000000e-01 : f32
    %7 = vector.broadcast %cst_2 : f32 to vector<4x128xf32>
    %8 = arith.mulf %7, %6 : vector<4x128xf32>
    %9 = arith.addf %8, %0 : vector<4x128xf32>
    %c127_i32 = arith.constant 127 : i32
    %10 = tpu.dynamic_rotate %0 by %c127_i32 dim 1 : vector<4x128xf32>, i32 -> vector<4x128xf32>
    %c127_i32_3 = arith.constant 127 : i32
    %11 = vector.broadcast %c127_i32_3 : i32 to vector<4x128xi32>
    %12 = arith.cmpi slt, %1, %11 : vector<4x128xi32>
    %cst_4 = arith.constant 0.000000e+00 : f32
    %13 = vector.broadcast %cst_4 : f32 to vector<4x128xf32>
    %14 = arith.select %12, %10, %13 : vector<4x128xi1>, vector<4x128xf32>
    %cst_5 = arith.constant 5.000000e-01 : f32
    %15 = vector.broadcast %cst_5 : f32 to vector<4x128xf32>
    %16 = arith.mulf %15, %14 : vector<4x128xf32>
    %17 = arith.addf %9, %16 : vector<4x128xf32>
    %c0_6 = arith.constant 0 : index
    %c0_7 = arith.constant 0 : index
    %18 = vector.load %arg2[%c0_6, %c0_7] : memref<4x128xf32, #tpu.memory_space<vmem>>, vector<4x128xf32>
    tpu.vector_store %arg2[%c0_6, %c0_7], %17 {strides = array<i32>} : memref<4x128xf32, #tpu.memory_space<vmem>>, vector<4x128xf32>,
    return
  }
  func.func @transform_0(%arg0: i32) -> (i32, i32) {
    %c0_i32 = arith.constant 0 : i32
    %c0_i32_0 = arith.constant 0 : i32
    return %arg0, %c0_i32 : i32, i32
  }
  func.func @transform_1(%arg0: i32) -> (i32, i32) {
    %c0_i32 = arith.constant 0 : i32
    %c0_i32_0 = arith.constant 0 : i32
    return %arg0, %c0_i32 : i32, i32
  }
}

</mosaic_0001>

<bundles_post_ra>
// kernel: tpu_custom_call.1
= control target key start
LH: loop header
LB: loop body
LE: loop exit
PB: predicated region body
PF: predicated region fallthrough
CT: control target
= control target key end

     0   :  { %6 = vsyncpa [#allocation3], 0  ;;  %s120_s0 = inlined_call_operand.hbm [shape: f32[4,128], index: 0, kind: input, shape index: {}]   ;;  %s121_s1 = inlined_call_operand.hbm [shape: f32[4,128], index: 1, kind: output, shape index: {}]  }
   0x1   :  { %7 = vsyncpa [#allocation4], 0  ;;  %s100_s6 = smov [#allocation2]  }
   0x2   :  { %s14_s7 = sshll.u32 %s100_s6, 4  ;;  %s15_s7 = int_to_ptr.vmem [resolvable:$true] %s14_s7 }
   0x3   :  { %s64_s8 = scalar_lea.vmem %s15_s7, 64  ;;  %p69_p1 = scmp.lt.s32.totalorder %s15_s7, %s15_s7 }
   0x4   :  { %p65_p0 = scmp.ne.s32.totalorder %s15_s7, %s64_s8  ;;  %p70_p2 = scmp.lt.s32.totalorder %s64_s8, %s64_s8 }
   0x6   :  { %p71_p3 = por %p70_p2, %p69_p1 }
   0x8   :  { %p72_p4 = pnand %p71_p3, %p65_p0 }
   0xa   :  { %75 = shalt.err (!%p72_p4)
}
   0xb   :  { %17 = dma.hbm_to_vmem [thread:$0]  %s120_s0, 64, %s15_s7, [#allocation3]  }
   0xc   :  { %96 = dma.done.wait [#allocation3], 64  }
   0xd   :  { %97 = vsyncadd [#allocation3], 4294967232  ;;  %v21_v0 = vld [vmem:[#allocation2] sm:$0xf]  ;;  %s101_s11 = smov 1   ;;  %s102_s12 = smov 127   ;;  %v22_v1 = vlaneseq }
   0xe   :  { %24 = vrot.lane.b32.xlu0 %v21_v0, %s101_s11  ;;  %s103_s13 = smov [#allocation5]  }
   0xf   :  { %v23_v2 = vand.u32 127, %v22_v1  ;;  %s43_s14 = sshll.u32 %s103_s13, 4  ;;  %s44_s14 = int_to_ptr.vmem [resolvable:$true] %s43_s14 }
  0x10   :  { %s76_s0 = scalar_lea.vmem %s44_s14, 64  ;;  %p81_p6 = scmp.lt.s32.totalorder %s44_s14, %s44_s14 }
  0x11   :  { %vm26_vm0 = vcmp.ge.s32.totalorder %v23_v2, 1  ;;  %vm32_vm1 = vcmp.lt.s32.totalorder %v23_v2, 127  ;;  %p77_p5 = scmp.ne.s32.totalorder %s44_s14, %s76_s0  ;;  %p82_p7 = scmp.lt.s32.totalorder %s76_s0, %s76_s0 }
  0x12   :  { %30 = vrot.lane.b32.xlu0 %v21_v0, %s102_s12 }
  0x13   :  { %p83_p8 = por %p82_p7, %p81_p6 }
  0x15   :  { %p84_p9 = pnand %p83_p8, %p77_p5 }
  0x80   :  { %v25_v3 = vpop.permute.xlu0 %24 }
  0x81   :  { %v27_v4 = vsel %vm26_vm0, %v25_v3, 0.0 }
  0x82   :  { %v28_v5 = vmul.f32 0.5, %v27_v4 }
  0x84   :  { %v31_v6 = vpop.permute.xlu0 %30  ;;  %v29_v8 = vadd.f32 %v28_v5, %v21_v0 }
  0x85   :  { %v33_v7 = vsel %vm32_vm1, %v31_v6, 0.0 }
  0x86   :  { %v34_v9 = vmul.f32 0.5, %v33_v7 }
  0x88   :  { %v35_v10 = vadd.f32 %v34_v9, %v29_v8 }
  0x8a   :  { %36 = vst [vmem:[#allocation5] sm:$0xf] %v35_v10 }
  0x8b   :  { %87 = shalt.err (!%p84_p9)
}
  0x8c   :  { %46 = dma.vmem_to_hbm [thread:$0]  %s44_s14, 64, %s121_s1, [#allocation4]  }
  0x8d   :  { %98 = dma.done.wait [#allocation4], 64  }
  0x8e   :  { %99 = vsyncadd [#allocation4], 4294967232 }
  0x8f   :  { %50 = vsyncpa [#allocation3], 1 }
  0x90   :  { %51 = vsyncpa [#allocation4], 1 }

</bundles_post_ra>
